<compile_context>
chip_gen: v5e
topology: v5e:2x2
jax: 0.10.0
libtpu: 0.0.40
codegen_flags: <defaults>
</compile_context>

<pallas_src>
import math
import functools

import jax
import jax.numpy as jnp
from jax import lax
from jax.experimental import pallas as pl
from jax.experimental.pallas import tpu as pltpu

LN_EPS = 1e-5


def _get_slopes(n):
    """ALiBi slopes, identical to the PyTorch reference."""
    def power_of_2(n):
        start = 2 ** (-2 ** (-(math.log2(n) - 3)))
        ratio = start
        return [start * ratio ** i for i in range(n)]
    if math.log2(n).is_integer():
        return power_of_2(n)
    closest = 2 ** math.floor(math.log2(n))
    return power_of_2(closest) + _get_slopes(2 * closest)[0::2][: n - closest]


def _layer_norm(x, gamma, beta):
    mu = jnp.mean(x, axis=-1, keepdims=True)
    var = jnp.mean((x - mu) ** 2, axis=-1, keepdims=True)
    return (x - mu) * lax.rsqrt(var + LN_EPS) * gamma + beta


def block_kernel(
    # inputs
    x_ref,             # (1, T, C) f32
    g1_ref, b1_ref,    # (1, C) layer_norm1
    wqkv_ref,          # (C, 3C) bf16  fused [Q | K | V], head-major column blocks
    bias_ref,          # (H, T, T) f32 precomputed ALiBi bias (+ causal -inf mask)
    wo_ref, bo_ref,    # (C, C) bf16, (1, C) f32
    g2_ref, b2_ref,    # (1, C) layer_norm2
    w1_ref, bb1_ref,   # (C, Hd) bf16, (1, Hd) f32
    w2_ref, bb2_ref,   # (Hd, C) bf16, (1, C) f32
    # outputs
    out_ref,           # (1, T, C) f32
    attw_ref,          # (1, H, T, T) f32
    # scratch
    attn_cat_ref,      # (T, C) f32 VMEM: concatenated head outputs (slice stores)
    *,
    n_head,
    head_size,
):
    x = x_ref[0]                                   # (T, C) f32
    C = x.shape[1]

    # ---- LayerNorm 1 (f32) ----
    h1 = _layer_norm(x, g1_ref[0], b1_ref[0])      # (T, C)

    # ---- fused QKV projection: one lane-dense MXU matmul ----
    qkv = jnp.dot(h1.astype(jnp.bfloat16), wqkv_ref[...],
                  preferred_element_type=jnp.float32)          # (T, 3C) f32
    qkv_b = qkv.astype(jnp.bfloat16)                           # matmul operands in bf16

    scale = head_size ** (-0.5)
    for h in range(n_head):                        # static unroll (n_head is small)
        lo = h * head_size
        hi = lo + head_size
        q = qkv_b[:, lo:hi]                        # (T, Hs) bf16
        k = qkv_b[:, C + lo:C + hi]                # (T, Hs) bf16
        v = qkv_b[:, 2 * C + lo:2 * C + hi]        # (T, Hs) bf16

        # scores = q @ k^T without materializing the transpose (contract last dims)
        s = lax.dot_general(q, k, (((1,), (1,)), ((), ())),
                            preferred_element_type=jnp.float32) * scale   # (T, T) f32
        s = s + bias_ref[h]                        # ALiBi bias + causal mask (hoisted)

        # softmax (f32), denominator via EUP approx reciprocal
        s = s - jnp.max(s, axis=-1, keepdims=True)
        p = jnp.exp(s)
        w = p * pl.reciprocal(jnp.sum(p, axis=-1, keepdims=True), approx=True)

        attw_ref[0, h] = w                         # attention weights (pre-dropout == eval)

        o = jnp.dot(w.astype(jnp.bfloat16), v,
                    preferred_element_type=jnp.float32)         # (T, Hs) f32
        attn_cat_ref[:, lo:hi] = o                 # slice-store instead of concatenate

    # ---- output projection ----
    attn_out = jnp.dot(attn_cat_ref[...].astype(jnp.bfloat16), wo_ref[...],
                       preferred_element_type=jnp.float32) + bo_ref[0]     # (T, C)

    # ---- residual 1 ----
    x1 = x + attn_out

    # ---- LayerNorm 2 + FeedForward ----
    h2 = _layer_norm(x1, g2_ref[0], b2_ref[0])
    ff = jnp.dot(h2.astype(jnp.bfloat16), w1_ref[...],
                 preferred_element_type=jnp.float32) + bb1_ref[0]
    ff = jnp.maximum(ff, 0.0)
    ff = jnp.dot(ff.astype(jnp.bfloat16), w2_ref[...],
                 preferred_element_type=jnp.float32) + bb2_ref[0]

    # ---- residual 2 ----
    out_ref[0] = x1 + ff


def _fuse_qkv(wq, wk, wv):
    """(H, C, Hs) x3 -> (C, 3*H*Hs) with head-major column blocks inside each of Q/K/V."""
    H, C, Hs = wq.shape
    def fuse(w):
        return jnp.transpose(w, (1, 0, 2)).reshape(C, H * Hs)
    return jnp.concatenate([fuse(wq), fuse(wk), fuse(wv)], axis=1)


def _alibi_bias(slopes, T, is_decoder):
    """Precompute slopes[h] * (j - i) with the causal mask folded in -> (H, T, T) f32."""
    r = jnp.arange(T, dtype=jnp.float32)
    diff = r[None, :] - r[:, None]                 # (T, T): j - i
    bias = slopes.reshape(-1, 1, 1) * diff[None]   # (H, T, T)
    if is_decoder:
        bias = jnp.where(diff[None] > 0, -jnp.inf, bias)
    return bias.astype(jnp.float32)


def transformer_block(x, params, *, n_head, is_decoder=False):
    B, T, C = x.shape
    head_size = C // n_head
    Hd = params["w1"].shape[1]

    # weight packing / casting (one-time, outside the kernel)
    wqkv = _fuse_qkv(params["wq"], params["wk"], params["wv"]).astype(jnp.bfloat16)
    bias = _alibi_bias(params["slopes"][:, 0, 0], T, is_decoder)
    wo = params["wo"].astype(jnp.bfloat16)
    w1 = params["w1"].astype(jnp.bfloat16)
    w2 = params["w2"].astype(jnp.bfloat16)

    kernel = functools.partial(block_kernel, n_head=n_head, head_size=head_size)

    full = lambda shape: pl.BlockSpec(shape, lambda b: (0,) * len(shape))

    grid_spec = pltpu.PrefetchScalarGridSpec(
        num_scalar_prefetch=0,
        grid=(B,),
        in_specs=[
            pl.BlockSpec((1, T, C), lambda b: (b, 0, 0)),          # x
            full((1, C)), full((1, C)),                            # ln1 gamma/beta
            full((C, 3 * C)),                                      # fused wqkv (bf16)
            full((n_head, T, T)),                                  # precomputed ALiBi bias
            full((C, C)), full((1, C)),                            # w_out (bf16), b_out
            full((1, C)), full((1, C)),                            # ln2 gamma/beta
            full((C, Hd)), full((1, Hd)),                          # ff w1 (bf16), b1
            full((Hd, C)), full((1, C)),                           # ff w2 (bf16), b2
        ],
        out_specs=[
            pl.BlockSpec((1, T, C), lambda b: (b, 0, 0)),          # block output
            pl.BlockSpec((1, n_head, T, T), lambda b: (b, 0, 0, 0)),  # attn weights
        ],
        scratch_shapes=[pltpu.VMEM((T, C), jnp.float32)],          # concat slab
    )

    out_shapes = (
        jax.ShapeDtypeStruct((B, T, C), jnp.float32),
        jax.ShapeDtypeStruct((B, n_head, T, T), jnp.float32),
    )

    return pl.pallas_call(
        kernel,
        grid_spec=grid_spec,
        out_shape=out_shapes,
        compiler_params=pltpu.CompilerParams(
            dimension_semantics=("parallel",),
            vmem_limit_bytes=48 * 1024 * 1024,
        ),
    )(
        x,
        params["g1"], params["b1"],
        wqkv,
        bias,
        wo, params["bo"],
        params["g2"], params["b2"],
        w1, params["bb1"],
        w2, params["bb2"],
    )


def reference_block(x, params, *, n_head, is_decoder=False):
    """Pure-JAX f32 reference (mirrors the PyTorch forward, dropout = identity)."""
    B, T, C = x.shape
    head_size = C // n_head

    def ln(x, g, b):
        mu = x.mean(-1, keepdims=True)
        var = ((x - mu) ** 2).mean(-1, keepdims=True)
        return (x - mu) / jnp.sqrt(var + LN_EPS) * g + b

    h = ln(x, params["g1"][0], params["b1"][0])
    diff = (jnp.arange(T)[None, :] - jnp.arange(T)[:, None]).astype(jnp.float32)
    outs, ws = [], []
    for i in range(n_head):
        q = h @ params["wq"][i]
        k = h @ params["wk"][i]
        v = h @ params["wv"][i]
        s = q @ jnp.swapaxes(k, -1, -2) * head_size ** (-0.5)
        s = s + params["slopes"][i, 0, 0] * diff[None]
        if is_decoder:
            s = jnp.where(diff[None] > 0, -jnp.inf, s)
        w = jax.nn.softmax(s, axis=-1)
        ws.append(w)
        outs.append(w @ v)
    out = jnp.concatenate(outs, axis=-1) @ params["wo"] + params["bo"][0]
    x1 = x + out
    h2 = ln(x1, params["g2"][0], params["b2"][0])
    ff = jnp.maximum(h2 @ params["w1"] + params["bb1"][0], 0.0) @ params["w2"] + params["bb2"][0]
    return x1 + ff, jnp.stack(ws, axis=1)


def make_params(key, n_embd, n_head, n_hidden):
    head_size = n_embd // n_head
    ks = jax.random.split(key, 8)
    scale = 0.1
    slopes = jnp.asarray(_get_slopes(n_head), dtype=jnp.float32).reshape(n_head, 1, 1)
    return {
        "g1": jnp.ones((1, n_embd), jnp.float32),
        "b1": jnp.zeros((1, n_embd), jnp.float32),
        "wq": scale * jax.random.normal(ks[0], (n_head, n_embd, head_size), jnp.float32),
        "wk": scale * jax.random.normal(ks[1], (n_head, n_embd, head_size), jnp.float32),
        "wv": scale * jax.random.normal(ks[2], (n_head, n_embd, head_size), jnp.float32),
        "slopes": slopes,
        "wo": scale * jax.random.normal(ks[3], (n_head * head_size, n_embd), jnp.float32),
        "bo": scale * jax.random.normal(ks[4], (1, n_embd), jnp.float32),
        "g2": jnp.ones((1, n_embd), jnp.float32),
        "b2": jnp.zeros((1, n_embd), jnp.float32),
        "w1": scale * jax.random.normal(ks[5], (n_embd, n_hidden), jnp.float32),
        "bb1": jnp.zeros((1, n_hidden), jnp.float32),
        "w2": scale * jax.random.normal(ks[6], (n_hidden, n_embd), jnp.float32),
        "bb2": jnp.zeros((1, n_embd), jnp.float32),
    }


if __name__ == "__main__":
    # small shapes consistent with the module: batch=2, seq=8, n_embd=32, heads=4, hidden=64
    B, T, C, H, Hd = 2, 8, 32, 4, 64
    key = jax.random.PRNGKey(0)
    kx, kp = jax.random.split(key)
    x = jax.random.normal(kx, (B, T, C), jnp.float32)
    params = make_params(kp, C, H, Hd)

    # TODO(synk): dropout is treated as identity (eval-mode semantics); no RNG dropout in-kernel.
    y, attw = transformer_block(x, params, n_head=H, is_decoder=True)
    y = jax.block_until_ready(y)
    attw = jax.block_until_ready(attw)

    y_ref, attw_ref = reference_block(x, params, n_head=H, is_decoder=True)
    assert y.shape == (B, T, C) and attw.shape == (B, H, T, T)
    # tolerances account for bf16 matmul operands (f32 accumulation) + approx reciprocal
    assert jnp.allclose(y, y_ref, atol=2e-2, rtol=2e-2)
    assert jnp.allclose(attw, attw_ref, atol=2e-2, rtol=2e-2)

    print("KERNEL_OK")
</pallas_src>

<mosaic_0001>
module attributes {stable_mosaic.version = 11 : i64} {
  func.func @block_kernel(%arg0: i32, %arg1: memref<1x8x32xf32, #tpu.memory_space<vmem>>, %arg2: memref<1x32xf32, #tpu.memory_space<vmem>>, %arg3: memref<1x32xf32, #tpu.memory_space<vmem>>, %arg4: memref<32x96xbf16, #tpu.memory_space<vmem>>, %arg5: memref<4x8x8xf32, #tpu.memory_space<vmem>>, %arg6: memref<32x32xbf16, #tpu.memory_space<vmem>>, %arg7: memref<1x32xf32, #tpu.memory_space<vmem>>, %arg8: memref<1x32xf32, #tpu.memory_space<vmem>>, %arg9: memref<1x32xf32, #tpu.memory_space<vmem>>, %arg10: memref<32x64xbf16, #tpu.memory_space<vmem>>, %arg11: memref<1x64xf32, #tpu.memory_space<vmem>>, %arg12: memref<64x32xbf16, #tpu.memory_space<vmem>>, %arg13: memref<1x32xf32, #tpu.memory_space<vmem>>, %arg14: memref<1x8x32xf32, #tpu.memory_space<vmem>>, %arg15: memref<1x4x8x8xf32, #tpu.memory_space<vmem>>, %arg16: memref<8x32xf32, #tpu.memory_space<vmem>>) attributes {dimension_semantics = [#tpu.dimension_semantics<parallel>], iteration_bounds = array<i64: 2>, scalar_prefetch = 0 : i64, scratch_operands = 1 : i64, tpu.core_type = #tpu.core_type<tc>, window_params = [{transform_indices = @transform_0, window_bounds = array<i64: 1, 8, 32>}, {pipeline_mode = #tpu.pipeline_mode<synchronous>, transform_indices = @transform_1, window_bounds = array<i64: 1, 32>}, {pipeline_mode = #tpu.pipeline_mode<synchronous>, transform_indices = @transform_2, window_bounds = array<i64: 1, 32>}, {pipeline_mode = #tpu.pipeline_mode<synchronous>, transform_indices = @transform_3, window_bounds = array<i64: 32, 96>}, {pipeline_mode = #tpu.pipeline_mode<synchronous>, transform_indices = @transform_4, window_bounds = array<i64: 4, 8, 8>}, {pipeline_mode = #tpu.pipeline_mode<synchronous>, transform_indices = @transform_5, window_bounds = array<i64: 32, 32>}, {pipeline_mode = #tpu.pipeline_mode<synchronous>, transform_indices = @transform_6, window_bounds = array<i64: 1, 32>}, {pipeline_mode = #tpu.pipeline_mode<synchronous>, transform_indices = @transform_7, window_bounds = array<i64: 1, 32>}, {pipeline_mode = #tpu.pipeline_mode<synchronous>, transform_indices = @transform_8, window_bounds = array<i64: 1, 32>}, {pipeline_mode = #tpu.pipeline_mode<synchronous>, transform_indices = @transform_9, window_bounds = array<i64: 32, 64>}, {pipeline_mode = #tpu.pipeline_mode<synchronous>, transform_indices = @transform_10, window_bounds = array<i64: 1, 64>}, {pipeline_mode = #tpu.pipeline_mode<synchronous>, transform_indices = @transform_11, window_bounds = array<i64: 64, 32>}, {pipeline_mode = #tpu.pipeline_mode<synchronous>, transform_indices = @transform_12, window_bounds = array<i64: 1, 32>}, {transform_indices = @transform_13, window_bounds = array<i64: 1, 8, 32>}, {transform_indices = @transform_14, window_bounds = array<i64: 1, 4, 8, 8>}]} {
    %c0 = arith.constant 0 : index
    %c0_0 = arith.constant 0 : index
    %c0_1 = arith.constant 0 : index
    %0 = vector.load %arg1[%c0, %c0_0, %c0_1] : memref<1x8x32xf32, #tpu.memory_space<vmem>>, vector<1x8x32xf32>
    %1 = vector.shape_cast %0 : vector<1x8x32xf32> to vector<8x32xf32>
    %c0_2 = arith.constant 0 : index
    %c0_3 = arith.constant 0 : index
    %2 = vector.load %arg2[%c0_2, %c0_3] : memref<1x32xf32, #tpu.memory_space<vmem>>, vector<1x32xf32>
    %3 = vector.shape_cast %2 : vector<1x32xf32> to vector<32xf32>
    %c0_4 = arith.constant 0 : index
    %c0_5 = arith.constant 0 : index
    %4 = vector.load %arg3[%c0_4, %c0_5] : memref<1x32xf32, #tpu.memory_space<vmem>>, vector<1x32xf32>
    %5 = vector.shape_cast %4 : vector<1x32xf32> to vector<32xf32>
    %cst = arith.constant dense<0.000000e+00> : vector<8xf32>
    %6 = vector.multi_reduction <add>, %1, %cst [1] : vector<8x32xf32> to vector<8xf32>
    %7 = vector.shape_cast %6 : vector<8xf32> to vector<8x1xf32>
    %cst_6 = arith.constant 3.200000e+01 : f32
    %8 = vector.broadcast %cst_6 : f32 to vector<8x1xf32>
    %9 = arith.divf %7, %8 : vector<8x1xf32>
    %10 = vector.broadcast %9 : vector<8x1xf32> to vector<8x32xf32>
    %11 = arith.subf %1, %10 : vector<8x32xf32>
    %12 = arith.mulf %11, %11 : vector<8x32xf32>
    %cst_7 = arith.constant dense<0.000000e+00> : vector<8xf32>
    %13 = vector.multi_reduction <add>, %12, %cst_7 [1] : vector<8x32xf32> to vector<8xf32>
    %14 = vector.shape_cast %13 : vector<8xf32> to vector<8x1xf32>
    %cst_8 = arith.constant 3.200000e+01 : f32
    %15 = vector.broadcast %cst_8 : f32 to vector<8x1xf32>
    %16 = arith.divf %14, %15 : vector<8x1xf32>
    %17 = vector.broadcast %9 : vector<8x1xf32> to vector<8x32xf32>
    %18 = arith.subf %1, %17 : vector<8x32xf32>
    %cst_9 = arith.constant 9.99999974E-6 : f32
    %19 = vector.broadcast %cst_9 : f32 to vector<8x1xf32>
    %20 = arith.addf %16, %19 : vector<8x1xf32>
    %21 = math.rsqrt %20 : vector<8x1xf32>
    %22 = vector.broadcast %21 : vector<8x1xf32> to vector<8x32xf32>
    %23 = arith.mulf %18, %22 : vector<8x32xf32>
    %24 = vector.shape_cast %3 : vector<32xf32> to vector<1x32xf32>
    %25 = vector.broadcast %24 : vector<1x32xf32> to vector<8x32xf32>
    %26 = arith.mulf %23, %25 : vector<8x32xf32>
    %27 = vector.shape_cast %5 : vector<32xf32> to vector<1x32xf32>
    %28 = vector.broadcast %27 : vector<1x32xf32> to vector<8x32xf32>
    %29 = arith.addf %26, %28 : vector<8x32xf32>
    %30 = arith.truncf %29 : vector<8x32xf32> to vector<8x32xbf16>
    %c0_10 = arith.constant 0 : index
    %c0_11 = arith.constant 0 : index
    %31 = vector.load %arg4[%c0_10, %c0_11] : memref<32x96xbf16, #tpu.memory_space<vmem>>, vector<32x96xbf16>
    %cst_12 = arith.constant dense<0.000000e+00> : vector<8x96xf32>
    %32 = tpu.matmul %30, %31, %cst_12 {dimension_numbers = #tpu.dot_dimension_numbers<[1], [0], [0], [1], [0, 0, 1, 1], [], []>} : vector<8x32xbf16>, vector<32x96xbf16>, vector<8x96xf32> -> vector<8x96xf32>
    %33 = arith.truncf %32 : vector<8x96xf32> to vector<8x96xbf16>
    %34 = vector.extract_strided_slice %33 {offsets = [0, 0], sizes = [8, 8], strides = [1, 1]} : vector<8x96xbf16> to vector<8x8xbf16>
    %35 = vector.extract_strided_slice %33 {offsets = [0, 32], sizes = [8, 8], strides = [1, 1]} : vector<8x96xbf16> to vector<8x8xbf16>
    %36 = vector.extract_strided_slice %33 {offsets = [0, 64], sizes = [8, 8], strides = [1, 1]} : vector<8x96xbf16> to vector<8x8xbf16>
    %cst_13 = arith.constant dense<0.000000e+00> : vector<8x8xf32>
    %37 = tpu.matmul %34, %35, %cst_13 {dimension_numbers = #tpu.dot_dimension_numbers<[1], [1], [0], [0], [0, 0, 1, 0], [], []>} : vector<8x8xbf16>, vector<8x8xbf16>, vector<8x8xf32> -> vector<8x8xf32>
    %cst_14 = arith.constant 0.353553385 : f32
    %38 = vector.broadcast %cst_14 : f32 to vector<8x8xf32>
    %39 = arith.mulf %37, %38 : vector<8x8xf32>
    %c0_15 = arith.constant 0 : index
    %c0_16 = arith.constant 0 : index
    %c0_17 = arith.constant 0 : index
    %40 = vector.load %arg5[%c0_15, %c0_16, %c0_17] : memref<4x8x8xf32, #tpu.memory_space<vmem>>, vector<1x8x8xf32>
    %41 = vector.shape_cast %40 : vector<1x8x8xf32> to vector<8x8xf32>
    %42 = arith.addf %39, %41 : vector<8x8xf32>
    %cst_18 = arith.constant dense<0xFF800000> : vector<8xf32>
    %43 = vector.multi_reduction <maximumf>, %42, %cst_18 [1] : vector<8x8xf32> to vector<8xf32>
    %44 = vector.shape_cast %43 : vector<8xf32> to vector<8x1xf32>
    %45 = vector.broadcast %44 : vector<8x1xf32> to vector<8x8xf32>
    %46 = arith.subf %42, %45 : vector<8x8xf32>
    %47 = math.exp %46 : vector<8x8xf32>
    %cst_19 = arith.constant dense<0.000000e+00> : vector<8xf32>
    %48 = vector.multi_reduction <add>, %47, %cst_19 [1] : vector<8x8xf32> to vector<8xf32>
    %49 = vector.shape_cast %48 : vector<8xf32> to vector<8x1xf32>
    %50 = tpu.reciprocal %49 {approx = true} : vector<8x1xf32> -> vector<8x1xf32>
    %51 = vector.broadcast %50 : vector<8x1xf32> to vector<8x8xf32>
    %52 = arith.mulf %47, %51 : vector<8x8xf32>
    %c0_20 = arith.constant 0 : index
    %c0_21 = arith.constant 0 : index
    %c0_22 = arith.constant 0 : index
    %c0_23 = arith.constant 0 : index
    %53 = vector.load %arg15[%c0_20, %c0_21, %c0_22, %c0_23] : memref<1x4x8x8xf32, #tpu.memory_space<vmem>>, vector<1x1x8x8xf32>
    %54 = vector.shape_cast %53 : vector<1x1x8x8xf32> to vector<8x8xf32>
    %55 = vector.shape_cast %52 : vector<8x8xf32> to vector<1x1x8x8xf32>
    tpu.vector_store %arg15[%c0_20, %c0_21, %c0_22, %c0_23], %55 {strides = array<i32>} : memref<1x4x8x8xf32, #tpu.memory_space<vmem>>, vector<1x1x8x8xf32>,
    %56 = arith.truncf %52 : vector<8x8xf32> to vector<8x8xbf16>
    %cst_24 = arith.constant dense<0.000000e+00> : vector<8x8xf32>
    %57 = tpu.matmul %56, %36, %cst_24 {dimension_numbers = #tpu.dot_dimension_numbers<[1], [0], [0], [1], [0, 0, 1, 1], [], []>} : vector<8x8xbf16>, vector<8x8xbf16>, vector<8x8xf32> -> vector<8x8xf32>
    %c0_25 = arith.constant 0 : index
    %c0_26 = arith.constant 0 : index
    %58 = vector.load %arg16[%c0_25, %c0_26] : memref<8x32xf32, #tpu.memory_space<vmem>>, vector<8x8xf32>
    tpu.vector_store %arg16[%c0_25, %c0_26], %57 {strides = array<i32>} : memref<8x32xf32, #tpu.memory_space<vmem>>, vector<8x8xf32>,
    %59 = vector.extract_strided_slice %33 {offsets = [0, 8], sizes = [8, 8], strides = [1, 1]} : vector<8x96xbf16> to vector<8x8xbf16>
    %60 = vector.extract_strided_slice %33 {offsets = [0, 40], sizes = [8, 8], strides = [1, 1]} : vector<8x96xbf16> to vector<8x8xbf16>
    %61 = vector.extract_strided_slice %33 {offsets = [0, 72], sizes = [8, 8], strides = [1, 1]} : vector<8x96xbf16> to vector<8x8xbf16>
    %cst_27 = arith.constant dense<0.000000e+00> : vector<8x8xf32>
    %62 = tpu.matmul %59, %60, %cst_27 {dimension_numbers = #tpu.dot_dimension_numbers<[1], [1], [0], [0], [0, 0, 1, 0], [], []>} : vector<8x8xbf16>, vector<8x8xbf16>, vector<8x8xf32> -> vector<8x8xf32>
    %cst_28 = arith.constant 0.353553385 : f32
    %63 = vector.broadcast %cst_28 : f32 to vector<8x8xf32>
    %64 = arith.mulf %62, %63 : vector<8x8xf32>
    %c1 = arith.constant 1 : index
    %c0_29 = arith.constant 0 : index
    %c0_30 = arith.constant 0 : index
    %65 = vector.load %arg5[%c1, %c0_29, %c0_30] : memref<4x8x8xf32, #tpu.memory_space<vmem>>, vector<1x8x8xf32>
    %66 = vector.shape_cast %65 : vector<1x8x8xf32> to vector<8x8xf32>
    %67 = arith.addf %64, %66 : vector<8x8xf32>
    %cst_31 = arith.constant dense<0xFF800000> : vector<8xf32>
    %68 = vector.multi_reduction <maximumf>, %67, %cst_31 [1] : vector<8x8xf32> to vector<8xf32>
    %69 = vector.shape_cast %68 : vector<8xf32> to vector<8x1xf32>
    %70 = vector.broadcast %69 : vector<8x1xf32> to vector<8x8xf32>
    %71 = arith.subf %67, %70 : vector<8x8xf32>
    %72 = math.exp %71 : vector<8x8xf32>
    %cst_32 = arith.constant dense<0.000000e+00> : vector<8xf32>
    %73 = vector.multi_reduction <add>, %72, %cst_32 [1] : vector<8x8xf32> to vector<8xf32>
    %74 = vector.shape_cast %73 : vector<8xf32> to vector<8x1xf32>
    %75 = tpu.reciprocal %74 {approx = true} : vector<8x1xf32> -> vector<8x1xf32>
    %76 = vector.broadcast %75 : vector<8x1xf32> to vector<8x8xf32>
    %77 = arith.mulf %72, %76 : vector<8x8xf32>
    %c0_33 = arith.constant 0 : index
    %c1_34 = arith.constant 1 : index
    %c0_35 = arith.constant 0 : index
    %c0_36 = arith.constant 0 : index
    %78 = vector.load %arg15[%c0_33, %c1_34, %c0_35, %c0_36] : memref<1x4x8x8xf32, #tpu.memory_space<vmem>>, vector<1x1x8x8xf32>
    %79 = vector.shape_cast %78 : vector<1x1x8x8xf32> to vector<8x8xf32>
    %80 = vector.shape_cast %77 : vector<8x8xf32> to vector<1x1x8x8xf32>
    tpu.vector_store %arg15[%c0_33, %c1_34, %c0_35, %c0_36], %80 {strides = array<i32>} : memref<1x4x8x8xf32, #tpu.memory_space<vmem>>, vector<1x1x8x8xf32>,
    %81 = arith.truncf %77 : vector<8x8xf32> to vector<8x8xbf16>
    %cst_37 = arith.constant dense<0.000000e+00> : vector<8x8xf32>
    %82 = tpu.matmul %81, %61, %cst_37 {dimension_numbers = #tpu.dot_dimension_numbers<[1], [0], [0], [1], [0, 0, 1, 1], [], []>} : vector<8x8xbf16>, vector<8x8xbf16>, vector<8x8xf32> -> vector<8x8xf32>
    %c0_38 = arith.constant 0 : index
    %c8 = arith.constant 8 : index
    %83 = vector.load %arg16[%c0_38, %c8] : memref<8x32xf32, #tpu.memory_space<vmem>>, vector<8x8xf32>
    tpu.vector_store %arg16[%c0_38, %c8], %82 {strides = array<i32>} : memref<8x32xf32, #tpu.memory_space<vmem>>, vector<8x8xf32>,
    %84 = vector.extract_strided_slice %33 {offsets = [0, 16], sizes = [8, 8], strides = [1, 1]} : vector<8x96xbf16> to vector<8x8xbf16>
    %85 = vector.extract_strided_slice %33 {offsets = [0, 48], sizes = [8, 8], strides = [1, 1]} : vector<8x96xbf16> to vector<8x8xbf16>
    %86 = vector.extract_strided_slice %33 {offsets = [0, 80], sizes = [8, 8], strides = [1, 1]} : vector<8x96xbf16> to vector<8x8xbf16>
    %cst_39 = arith.constant dense<0.000000e+00> : vector<8x8xf32>
    %87 = tpu.matmul %84, %85, %cst_39 {dimension_numbers = #tpu.dot_dimension_numbers<[1], [1], [0], [0], [0, 0, 1, 0], [], []>} : vector<8x8xbf16>, vector<8x8xbf16>, vector<8x8xf32> -> vector<8x8xf32>
    %cst_40 = arith.constant 0.353553385 : f32
    %88 = vector.broadcast %cst_40 : f32 to vector<8x8xf32>
    %89 = arith.mulf %87, %88 : vector<8x8xf32>
    %c2 = arith.constant 2 : index
    %c0_41 = arith.constant 0 : index
    %c0_42 = arith.constant 0 : index
    %90 = vector.load %arg5[%c2, %c0_41, %c0_42] : memref<4x8x8xf32, #tpu.memory_space<vmem>>, vector<1x8x8xf32>
    %91 = vector.shape_cast %90 : vector<1x8x8xf32> to vector<8x8xf32>
    %92 = arith.addf %89, %91 : vector<8x8xf32>
    %cst_43 = arith.constant dense<0xFF800000> : vector<8xf32>
    %93 = vector.multi_reduction <maximumf>, %92, %cst_43 [1] : vector<8x8xf32> to vector<8xf32>
    %94 = vector.shape_cast %93 : vector<8xf32> to vector<8x1xf32>
    %95 = vector.broadcast %94 : vector<8x1xf32> to vector<8x8xf32>
    %96 = arith.subf %92, %95 : vector<8x8xf32>
    %97 = math.exp %96 : vector<8x8xf32>
    %cst_44 = arith.constant dense<0.000000e+00> : vector<8xf32>
    %98 = vector.multi_reduction <add>, %97, %cst_44 [1] : vector<8x8xf32> to vector<8xf32>
    %99 = vector.shape_cast %98 : vector<8xf32> to vector<8x1xf32>
    %100 = tpu.reciprocal %99 {approx = true} : vector<8x1xf32> -> vector<8x1xf32>
    %101 = vector.broadcast %100 : vector<8x1xf32> to vector<8x8xf32>
    %102 = arith.mulf %97, %101 : vector<8x8xf32>
    %c0_45 = arith.constant 0 : index
    %c2_46 = arith.constant 2 : index
    %c0_47 = arith.constant 0 : index
    %c0_48 = arith.constant 0 : index
    %103 = vector.load %arg15[%c0_45, %c2_46, %c0_47, %c0_48] : memref<1x4x8x8xf32, #tpu.memory_space<vmem>>, vector<1x1x8x8xf32>
    %104 = vector.shape_cast %103 : vector<1x1x8x8xf32> to vector<8x8xf32>
    %105 = vector.shape_cast %102 : vector<8x8xf32> to vector<1x1x8x8xf32>
    tpu.vector_store %arg15[%c0_45, %c2_46, %c0_47, %c0_48], %105 {strides = array<i32>} : memref<1x4x8x8xf32, #tpu.memory_space<vmem>>, vector<1x1x8x8xf32>,
    %106 = arith.truncf %102 : vector<8x8xf32> to vector<8x8xbf16>
    %cst_49 = arith.constant dense<0.000000e+00> : vector<8x8xf32>
    %107 = tpu.matmul %106, %86, %cst_49 {dimension_numbers = #tpu.dot_dimension_numbers<[1], [0], [0], [1], [0, 0, 1, 1], [], []>} : vector<8x8xbf16>, vector<8x8xbf16>, vector<8x8xf32> -> vector<8x8xf32>
    %c0_50 = arith.constant 0 : index
    %c16 = arith.constant 16 : index
    %108 = vector.load %arg16[%c0_50, %c16] : memref<8x32xf32, #tpu.memory_space<vmem>>, vector<8x8xf32>
    tpu.vector_store %arg16[%c0_50, %c16], %107 {strides = array<i32>} : memref<8x32xf32, #tpu.memory_space<vmem>>, vector<8x8xf32>,
    %109 = vector.extract_strided_slice %33 {offsets = [0, 24], sizes = [8, 8], strides = [1, 1]} : vector<8x96xbf16> to vector<8x8xbf16>
    %110 = vector.extract_strided_slice %33 {offsets = [0, 56], sizes = [8, 8], strides = [1, 1]} : vector<8x96xbf16> to vector<8x8xbf16>
    %111 = vector.extract_strided_slice %33 {offsets = [0, 88], sizes = [8, 8], strides = [1, 1]} : vector<8x96xbf16> to vector<8x8xbf16>
    %cst_51 = arith.constant dense<0.000000e+00> : vector<8x8xf32>
    %112 = tpu.matmul %109, %110, %cst_51 {dimension_numbers = #tpu.dot_dimension_numbers<[1], [1], [0], [0], [0, 0, 1, 0], [], []>} : vector<8x8xbf16>, vector<8x8xbf16>, vector<8x8xf32> -> vector<8x8xf32>
    %cst_52 = arith.constant 0.353553385 : f32
    %113 = vector.broadcast %cst_52 : f32 to vector<8x8xf32>
    %114 = arith.mulf %112, %113 : vector<8x8xf32>
    %c3 = arith.constant 3 : index
    %c0_53 = arith.constant 0 : index
    %c0_54 = arith.constant 0 : index
    %115 = vector.load %arg5[%c3, %c0_53, %c0_54] : memref<4x8x8xf32, #tpu.memory_space<vmem>>, vector<1x8x8xf32>
    %116 = vector.shape_cast %115 : vector<1x8x8xf32> to vector<8x8xf32>
    %117 = arith.addf %114, %116 : vector<8x8xf32>
    %cst_55 = arith.constant dense<0xFF800000> : vector<8xf32>
    %118 = vector.multi_reduction <maximumf>, %117, %cst_55 [1] : vector<8x8xf32> to vector<8xf32>
    %119 = vector.shape_cast %118 : vector<8xf32> to vector<8x1xf32>
    %120 = vector.broadcast %119 : vector<8x1xf32> to vector<8x8xf32>
    %121 = arith.subf %117, %120 : vector<8x8xf32>
    %122 = math.exp %121 : vector<8x8xf32>
    %cst_56 = arith.constant dense<0.000000e+00> : vector<8xf32>
    %123 = vector.multi_reduction <add>, %122, %cst_56 [1] : vector<8x8xf32> to vector<8xf32>
    %124 = vector.shape_cast %123 : vector<8xf32> to vector<8x1xf32>
    %125 = tpu.reciprocal %124 {approx = true} : vector<8x1xf32> -> vector<8x1xf32>
    %126 = vector.broadcast %125 : vector<8x1xf32> to vector<8x8xf32>
    %127 = arith.mulf %122, %126 : vector<8x8xf32>
    %c0_57 = arith.constant 0 : index
    %c3_58 = arith.constant 3 : index
    %c0_59 = arith.constant 0 : index
    %c0_60 = arith.constant 0 : index
    %128 = vector.load %arg15[%c0_57, %c3_58, %c0_59, %c0_60] : memref<1x4x8x8xf32, #tpu.memory_space<vmem>>, vector<1x1x8x8xf32>
    %129 = vector.shape_cast %128 : vector<1x1x8x8xf32> to vector<8x8xf32>
    %130 = vector.shape_cast %127 : vector<8x8xf32> to vector<1x1x8x8xf32>
    tpu.vector_store %arg15[%c0_57, %c3_58, %c0_59, %c0_60], %130 {strides = array<i32>} : memref<1x4x8x8xf32, #tpu.memory_space<vmem>>, vector<1x1x8x8xf32>,
    %131 = arith.truncf %127 : vector<8x8xf32> to vector<8x8xbf16>
    %cst_61 = arith.constant dense<0.000000e+00> : vector<8x8xf32>
    %132 = tpu.matmul %131, %111, %cst_61 {dimension_numbers = #tpu.dot_dimension_numbers<[1], [0], [0], [1], [0, 0, 1, 1], [], []>} : vector<8x8xbf16>, vector<8x8xbf16>, vector<8x8xf32> -> vector<8x8xf32>
    %c0_62 = arith.constant 0 : index
    %c24 = arith.constant 24 : index
    %133 = vector.load %arg16[%c0_62, %c24] : memref<8x32xf32, #tpu.memory_space<vmem>>, vector<8x8xf32>
    tpu.vector_store %arg16[%c0_62, %c24], %132 {strides = array<i32>} : memref<8x32xf32, #tpu.memory_space<vmem>>, vector<8x8xf32>,
    %c0_63 = arith.constant 0 : index
    %c0_64 = arith.constant 0 : index
    %134 = vector.load %arg16[%c0_63, %c0_64] : memref<8x32xf32, #tpu.memory_space<vmem>>, vector<8x32xf32>
    %135 = arith.truncf %134 : vector<8x32xf32> to vector<8x32xbf16>
    %c0_65 = arith.constant 0 : index
    %c0_66 = arith.constant 0 : index
    %136 = vector.load %arg6[%c0_65, %c0_66] : memref<32x32xbf16, #tpu.memory_space<vmem>>, vector<32x32xbf16>
    %cst_67 = arith.constant dense<0.000000e+00> : vector<8x32xf32>
    %137 = tpu.matmul %135, %136, %cst_67 {dimension_numbers = #tpu.dot_dimension_numbers<[1], [0], [0], [1], [0, 0, 1, 1], [], []>} : vector<8x32xbf16>, vector<32x32xbf16>, vector<8x32xf32> -> vector<8x32xf32>
    %c0_68 = arith.constant 0 : index
    %c0_69 = arith.constant 0 : index
    %138 = vector.load %arg7[%c0_68, %c0_69] : memref<1x32xf32, #tpu.memory_space<vmem>>, vector<1x32xf32>
    %139 = vector.shape_cast %138 : vector<1x32xf32> to vector<32xf32>
    %140 = vector.shape_cast %139 : vector<32xf32> to vector<1x32xf32>
    %141 = vector.broadcast %140 : vector<1x32xf32> to vector<8x32xf32>
    %142 = arith.addf %137, %141 : vector<8x32xf32>
    %143 = arith.addf %1, %142 : vector<8x32xf32>
    %c0_70 = arith.constant 0 : index
    %c0_71 = arith.constant 0 : index
    %144 = vector.load %arg8[%c0_70, %c0_71] : memref<1x32xf32, #tpu.memory_space<vmem>>, vector<1x32xf32>
    %145 = vector.shape_cast %144 : vector<1x32xf32> to vector<32xf32>
    %c0_72 = arith.constant 0 : index
    %c0_73 = arith.constant 0 : index
    %146 = vector.load %arg9[%c0_72, %c0_73] : memref<1x32xf32, #tpu.memory_space<vmem>>, vector<1x32xf32>
    %147 = vector.shape_cast %146 : vector<1x32xf32> to vector<32xf32>
    %cst_74 = arith.constant dense<0.000000e+00> : vector<8xf32>
    %148 = vector.multi_reduction <add>, %143, %cst_74 [1] : vector<8x32xf32> to vector<8xf32>
    %149 = vector.shape_cast %148 : vector<8xf32> to vector<8x1xf32>
    %cst_75 = arith.constant 3.200000e+01 : f32
    %150 = vector.broadcast %cst_75 : f32 to vector<8x1xf32>
    %151 = arith.divf %149, %150 : vector<8x1xf32>
    %152 = vector.broadcast %151 : vector<8x1xf32> to vector<8x32xf32>
    %153 = arith.subf %143, %152 : vector<8x32xf32>
    %154 = arith.mulf %153, %153 : vector<8x32xf32>
    %cst_76 = arith.constant dense<0.000000e+00> : vector<8xf32>
    %155 = vector.multi_reduction <add>, %154, %cst_76 [1] : vector<8x32xf32> to vector<8xf32>
    %156 = vector.shape_cast %155 : vector<8xf32> to vector<8x1xf32>
    %cst_77 = arith.constant 3.200000e+01 : f32
    %157 = vector.broadcast %cst_77 : f32 to vector<8x1xf32>
    %158 = arith.divf %156, %157 : vector<8x1xf32>
    %159 = vector.broadcast %151 : vector<8x1xf32> to vector<8x32xf32>
    %160 = arith.subf %143, %159 : vector<8x32xf32>
    %cst_78 = arith.constant 9.99999974E-6 : f32
    %161 = vector.broadcast %cst_78 : f32 to vector<8x1xf32>
    %162 = arith.addf %158, %161 : vector<8x1xf32>
    %163 = math.rsqrt %162 : vector<8x1xf32>
    %164 = vector.broadcast %163 : vector<8x1xf32> to vector<8x32xf32>
    %165 = arith.mulf %160, %164 : vector<8x32xf32>
    %166 = vector.shape_cast %145 : vector<32xf32> to vector<1x32xf32>
    %167 = vector.broadcast %166 : vector<1x32xf32> to vector<8x32xf32>
    %168 = arith.mulf %165, %167 : vector<8x32xf32>
    %169 = vector.shape_cast %147 : vector<32xf32> to vector<1x32xf32>
    %170 = vector.broadcast %169 : vector<1x32xf32> to vector<8x32xf32>
    %171 = arith.addf %168, %170 : vector<8x32xf32>
    %172 = arith.truncf %171 : vector<8x32xf32> to vector<8x32xbf16>
    %c0_79 = arith.constant 0 : index
    %c0_80 = arith.constant 0 : index
    %173 = vector.load %arg10[%c0_79, %c0_80] : memref<32x64xbf16, #tpu.memory_space<vmem>>, vector<32x64xbf16>
    %cst_81 = arith.constant dense<0.000000e+00> : vector<8x64xf32>
    %174 = tpu.matmul %172, %173, %cst_81 {dimension_numbers = #tpu.dot_dimension_numbers<[1], [0], [0], [1], [0, 0, 1, 1], [], []>} : vector<8x32xbf16>, vector<32x64xbf16>, vector<8x64xf32> -> vector<8x64xf32>
    %c0_82 = arith.constant 0 : index
    %c0_83 = arith.constant 0 : index
    %175 = vector.load %arg11[%c0_82, %c0_83] : memref<1x64xf32, #tpu.memory_space<vmem>>, vector<1x64xf32>
    %176 = vector.shape_cast %175 : vector<1x64xf32> to vector<64xf32>
    %177 = vector.shape_cast %176 : vector<64xf32> to vector<1x64xf32>
    %178 = vector.broadcast %177 : vector<1x64xf32> to vector<8x64xf32>
    %179 = arith.addf %174, %178 : vector<8x64xf32>
    %cst_84 = arith.constant 0.000000e+00 : f32
    %180 = vector.broadcast %cst_84 : f32 to vector<8x64xf32>
    %181 = arith.maximumf %179, %180 : vector<8x64xf32>
    %182 = arith.truncf %181 : vector<8x64xf32> to vector<8x64xbf16>
    %c0_85 = arith.constant 0 : index
    %c0_86 = arith.constant 0 : index
    %183 = vector.load %arg12[%c0_85, %c0_86] : memref<64x32xbf16, #tpu.memory_space<vmem>>, vector<64x32xbf16>
    %cst_87 = arith.constant dense<0.000000e+00> : vector<8x32xf32>
    %184 = tpu.matmul %182, %183, %cst_87 {dimension_numbers = #tpu.dot_dimension_numbers<[1], [0], [0], [1], [0, 0, 1, 1], [], []>} : vector<8x64xbf16>, vector<64x32xbf16>, vector<8x32xf32> -> vector<8x32xf32>
    %c0_88 = arith.constant 0 : index
    %c0_89 = arith.constant 0 : index
    %185 = vector.load %arg13[%c0_88, %c0_89] : memref<1x32xf32, #tpu.memory_space<vmem>>, vector<1x32xf32>
    %186 = vector.shape_cast %185 : vector<1x32xf32> to vector<32xf32>
    %187 = vector.shape_cast %186 : vector<32xf32> to vector<1x32xf32>
    %188 = vector.broadcast %187 : vector<1x32xf32> to vector<8x32xf32>
    %189 = arith.addf %184, %188 : vector<8x32xf32>
    %190 = arith.addf %143, %189 : vector<8x32xf32>
    %c0_90 = arith.constant 0 : index
    %c0_91 = arith.constant 0 : index
    %c0_92 = arith.constant 0 : index
    %191 = vector.load %arg14[%c0_90, %c0_91, %c0_92] : memref<1x8x32xf32, #tpu.memory_space<vmem>>, vector<1x8x32xf32>
    %192 = vector.shape_cast %191 : vector<1x8x32xf32> to vector<8x32xf32>
    %193 = vector.shape_cast %190 : vector<8x32xf32> to vector<1x8x32xf32>
    tpu.vector_store %arg14[%c0_90, %c0_91, %c0_92], %193 {strides = array<i32>} : memref<1x8x32xf32, #tpu.memory_space<vmem>>, vector<1x8x32xf32>,
    return
  }
  func.func @transform_0(%arg0: i32) -> (i32, i32, i32) {
    %c0_i32 = arith.constant 0 : i32
    %c0_i32_0 = arith.constant 0 : i32
    %c0_i32_1 = arith.constant 0 : i32
    return %arg0, %c0_i32, %c0_i32_0 : i32, i32, i32
  }
  func.func @transform_1(%arg0: i32) -> (i32, i32) {
    %c0_i32 = arith.constant 0 : i32
    %c0_i32_0 = arith.constant 0 : i32
    %c0_i32_1 = arith.constant 0 : i32
    return %c0_i32, %c0_i32_0 : i32, i32
  }
  func.func @transform_2(%arg0: i32) -> (i32, i32) {
    %c0_i32 = arith.constant 0 : i32
    %c0_i32_0 = arith.constant 0 : i32
    %c0_i32_1 = arith.constant 0 : i32
    return %c0_i32, %c0_i32_0 : i32, i32
  }
  func.func @transform_3(%arg0: i32) -> (i32, i32) {
    %c0_i32 = arith.constant 0 : i32
    %c0_i32_0 = arith.constant 0 : i32
    %c0_i32_1 = arith.constant 0 : i32
    return %c0_i32, %c0_i32_0 : i32, i32
  }
  func.func @transform_4(%arg0: i32) -> (i32, i32, i32) {
    %c0_i32 = arith.constant 0 : i32
    %c0_i32_0 = arith.constant 0 : i32
    %c0_i32_1 = arith.constant 0 : i32
    %c0_i32_2 = arith.constant 0 : i32
    return %c0_i32, %c0_i32_0, %c0_i32_1 : i32, i32, i32
  }
  func.func @transform_5(%arg0: i32) -> (i32, i32) {
    %c0_i32 = arith.constant 0 : i32
    %c0_i32_0 = arith.constant 0 : i32
    %c0_i32_1 = arith.constant 0 : i32
    return %c0_i32, %c0_i32_0 : i32, i32
  }
  func.func @transform_6(%arg0: i32) -> (i32, i32) {
    %c0_i32 = arith.constant 0 : i32
    %c0_i32_0 = arith.constant 0 : i32
    %c0_i32_1 = arith.constant 0 : i32
    return %c0_i32, %c0_i32_0 : i32, i32
  }
  func.func @transform_7(%arg0: i32) -> (i32, i32) {
    %c0_i32 = arith.constant 0 : i32
    %c0_i32_0 = arith.constant 0 : i32
    %c0_i32_1 = arith.constant 0 : i32
    return %c0_i32, %c0_i32_0 : i32, i32
  }
  func.func @transform_8(%arg0: i32) -> (i32, i32) {
    %c0_i32 = arith.constant 0 : i32
    %c0_i32_0 = arith.constant 0 : i32
    %c0_i32_1 = arith.constant 0 : i32
    return %c0_i32, %c0_i32_0 : i32, i32
  }
  func.func @transform_9(%arg0: i32) -> (i32, i32) {
    %c0_i32 = arith.constant 0 : i32
    %c0_i32_0 = arith.constant 0 : i32
    %c0_i32_1 = arith.constant 0 : i32
    return %c0_i32, %c0_i32_0 : i32, i32
  }
  func.func @transform_10(%arg0: i32) -> (i32, i32) {
    %c0_i32 = arith.constant 0 : i32
    %c0_i32_0 = arith.constant 0 : i32
    %c0_i32_1 = arith.constant 0 : i32
    return %c0_i32, %c0_i32_0 : i32, i32
  }
  func.func @transform_11(%arg0: i32) -> (i32, i32) {
    %c0_i32 = arith.constant 0 : i32
    %c0_i32_0 = arith.constant 0 : i32
    %c0_i32_1 = arith.constant 0 : i32
    return %c0_i32, %c0_i32_0 : i32, i32
  }
  func.func @transform_12(%arg0: i32) -> (i32, i32) {
    %c0_i32 = arith.constant 0 : i32
    %c0_i32_0 = arith.constant 0 : i32
    %c0_i32_1 = arith.constant 0 : i32
    return %c0_i32, %c0_i32_0 : i32, i32
  }
  func.func @transform_13(%arg0: i32) -> (i32, i32, i32) {
    %c0_i32 = arith.constant 0 : i32
    %c0_i32_0 = arith.constant 0 : i32
    %c0_i32_1 = arith.constant 0 : i32
    return %arg0, %c0_i32, %c0_i32_0 : i32, i32, i32
  }
  func.func @transform_14(%arg0: i32) -> (i32, i32, i32, i32) {
    %c0_i32 = arith.constant 0 : i32
    %c0_i32_0 = arith.constant 0 : i32
    %c0_i32_1 = arith.constant 0 : i32
    %c0_i32_2 = arith.constant 0 : i32
    return %arg0, %c0_i32, %c0_i32_0, %c0_i32_1 : i32, i32, i32, i32
  }
}

</mosaic_0001>

<bundles_post_ra>
// kernel: tpu_custom_call.1
= control target key start
LH: loop header
LB: loop body
LE: loop exit
PB: predicated region body
PF: predicated region fallthrough
CT: control target
= control target key end

     0   :  { %s1958_s0 = inlined_call_operand.vmem [shape: f32[2,8,32], index: 0, kind: input, shape index: {}]   ;;  %s1959_s1 = inlined_call_operand.vmem [shape: f32[1,32], index: 1, kind: input, shape index: {}]   ;;  %s1960_s2 = inlined_call_operand.vmem [shape: f32[1,32], index: 2, kind: input, shape index: {}]   ;;  %s1961_s3 = inlined_call_operand.hbm [shape: bf16[32,96], index: 3, kind: input, shape index: {}]   ;;  %s1962_s4 = inlined_call_operand.vmem [shape: f32[4,8,8], index: 4, kind: input, shape index: {}]   ;;  %s1963_s5 = inlined_call_operand.hbm [shape: bf16[32,32], index: 5, kind: input, shape index: {}]   ;;  %s1964_s6 = inlined_call_operand.vmem [shape: f32[1,32], index: 6, kind: input, shape index: {}]   ;;  %s1965_s7 = inlined_call_operand.vmem [shape: f32[1,32], index: 7, kind: input, shape index: {}]   ;;  %s1966_s8 = inlined_call_operand.vmem [shape: f32[1,32], index: 8, kind: input, shape index: {}]   ;;  %s1967_s9 = inlined_call_operand.hbm [shape: bf16[32,64], index: 9, kind: input, shape index: {}]   ;;  %s1968_s10 = inlined_call_operand.vmem [shape: f32[1,64], index: 10, kind: input, shape index: {}]   ;;  %s1969_s11 = inlined_call_operand.vmem [shape: bf16[64,32], index: 11, kind: input, shape index: {}]   ;;  %s1970_s12 = inlined_call_operand.vmem [shape: f32[1,32], index: 12, kind: input, shape index: {}]   ;;  %s1971_s13 = inlined_call_operand.hbm [shape: f32[2,8,32], index: 13, kind: output, shape index: {0}]   ;;  %s1972_s14 = inlined_call_operand.hbm [shape: f32[2,4,8,8], index: 14, kind: output, shape index: {1}]  }
   0x1   :  { %1980 = sst [smem:[#allocation22_spill]] %s1958_s0 }
   0x2   :  { %1981 = sst [smem:[#allocation23_spill]] %s1961_s3 }
   0x3   :  { %1982 = sst [smem:[#allocation24_spill]] %s1963_s5 }
   0x4   :  { %20 = vsyncpa [#allocation4], 0 }
   0x5   :  { %21 = vsyncpa [#allocation7], 0 }
   0x6   :  { %22 = vsyncpa [#allocation5], 0 }
   0x7   :  { %24 = vsyncpa [#allocation5 + $0x1], 0 }
   0x8   :  { %25 = vsyncpa [#allocation11], 0 }
   0x9   :  { %27 = vsyncpa [#allocation11 + $0x1], 0  ;;  %s1695_s29 = smov 0   ;;  %s1697_s30 = smov 0  }
   0xa   :  { %s1699_s15 = smov 0   ;;  %s1701_s16 = smov 0  }
   0xb LB: > { %1983 = sst [smem:[#allocation16_spill]] %s1585_s29  ;;  %s1716_s17 = sadd.s32 4294967295, %s1597_s16   ;;  %s1597_s16 = sphi %s1701_s16, %s2000_s16   ;;  %s1593_s15 = sphi %s1699_s15, %s2002_s15   ;;  %s1589_s30 = sphi %s1697_s30, %s2004_s30   ;;  %s1585_s29 = sphi %s1695_s29, %s2003_s29  }
   0xc   : > { %1984 = sst [smem:[#allocation17_spill]] %s1593_s15  ;;  %s1194_s18 = sadd.s32 4294967294, %s1597_s16  }
   0xd   : > { %1985 = sst [smem:[#allocation18_spill]] %s1597_s16  ;;  %s1720_s19 = sadd.s32 1, %s1597_s16  }
   0xe   : > { %1986 = sst [smem:[#allocation19_spill]] %s1720_s19  ;;  %s318_s20 = sadd.s32 1, %s1593_s15 }
   0xf   : > { %s315_s21 = ssub.s32 %s1597_s16, %s1720_s19  ;;  %p328_p0 = scmp.ne.s32.totalorder %s1593_s15, %s1589_s30 }
  0x10   : > { %p316_p1 = scmp.eq.s32.totalorder %s315_s21, 0  ;;  %p329_p2 = scmp.eq.s32.totalorder %s1716_s17, 1 }
  0x11   : > { %p334_p3 = scmp.ne.s32.totalorder %s1589_s30, %s1585_s29  ;;  %p335_p4 = scmp.eq.s32.totalorder %s1194_s18, 1 }
  0x12   : > { %s1731_s22 = scalar_select %p316_p1, %s1593_s15, %s318_s20  }
  0x13   : > { %p1733_p5 = por %p329_p2, %p328_p0  ;;  %p1737_p6 = por %p335_p4, %p334_p3 }
  0x14   : > { %1987 = sst [smem:[#allocation20_spill]] %s1731_s22  ;;  %p1195_p7 = scmp.ge.s32.totalorder %s1597_s16, 1 }
  0x15   : > { %s1989_s24 = scalar_select %p1737_p6, 1, 0 }
  0x16   : > { %p368_p8 = scmp.lt.s32.totalorder %s1597_s16, 3  ;;  %p1316_p9 = scmp.eq.s32.totalorder %s1716_s17, 0 }
  0x17   : > { %1990 = sst [smem:[#allocation21_spill]] %s1989_s24  ;;  %s1599_s15 = smov [#allocation6]  }
  0x18   : > { %p1744_p10 = pnand %p1195_p7, %p368_p8  ;;  %s1992_s5 = sld [smem:[#allocation24_spill]] }
  0x19   : > { %s1993_s3 = sld [smem:[#allocation23_spill]]  ;;  %s404_s19 = sshll.u32 %s1599_s15, 4  ;;  %s405_s19 = int_to_ptr.vmem [resolvable:$true] %s404_s19 }
  0x1a   : > { %p1299_p11 = pneg %p1744_p10  ;;  %s1600_s26 = smov 64  }
  0x1b   : > { %s1601_s27 = smov 4   ;;  %s1603_s29 = smov [#allocation8]  }
  0x1c   : > { %p1758_p12 = pnand %p1316_p9, %p1299_p11  ;;  %s427_s16 = sshll.u32 %s1603_s29, 4  ;;  %s428_s16 = int_to_ptr.vmem [resolvable:$true] %s427_s16 }
  0x1e   : > { %s402_s28 = sshll.u32 %s1992_s5, 4  ;;  %s1602_s5 = smov [#allocation3]   ;;  %s403_s28 = int_to_ptr.hbm [resolvable:$true] %s402_s28 }
  0x1f   : > { %s385_s21 = sshll.u32 %s1993_s3, 4  ;;  %s387_s24 = sshll.u32 %s1602_s5, 4  ;;  %s386_s21 = int_to_ptr.hbm [resolvable:$true] %s385_s21  ;;  %s388_s24 = int_to_ptr.vmem [resolvable:$true] %s387_s24 }
  0x20   : > { %1305 = dma.hbm_to_vmem [thread:$0]  (!%p1758_p12), %s403_s28, 256, %s405_s19, [#allocation7], %s1600_s26, %s1600_s26, %s1601_s27  }
  0x21   : > { %s425_s3 = sshll.u32 %s1967_s9, 4  ;;  %459 = sbr.rel (%p1744_p10) target bundleno = 1922 (0x782), region = 72  ;;  %s426_s3 = int_to_ptr.hbm [resolvable:$true] %s425_s3 }
  0x22   : > { %1302 = dma.hbm_to_vmem [thread:$0]  (!%p1758_p12), %s386_s21, 256, %s388_s24, [#allocation4], %s1600_s26, %s1600_s26, %s1601_s27  }
  0x23   : > { %1308 = dma.hbm_to_vmem [thread:$0]  (!%p1758_p12), %s426_s3, 256, %s428_s16, [#allocation7], %s1600_s26, %s1600_s26, %s1601_s27  }
  0x26   : > { %1568 = dma.done.wait (%p1316_p9), [#allocation4], 256  }
  0x27   : > { %1570 = vsyncadd (%p1316_p9), [#allocation4], 4294967040 }
  0x28   : > { %1572 = dma.done.wait (%p1316_p9), [#allocation7], 512  }
  0x29   : > { %1574 = vsyncadd (%p1316_p9), [#allocation7], 4294966784  ;;  %p520_p13 = scmp.lt.s32.totalorder %s1716_s17, 1  ;;  %s1995_s0 = sld [smem:[#allocation22_spill]]  ;;  %vm528_vm0 = vcmask 261120   ;;  %v1604_v2 = vmov 32.0  }
  0x2a   : > { %1383 = vrcp.f32 %v1604_v2  ;;  %v1273_v14 = vld [vmem:[#allocation3 + $0x8] sm:$0xff]  ;;  %v1272_v15 = vld [vmem:[#allocation3] sm:$0xff]  ;;  %v1376_v25 = vld [vmem:[%s1959_s1] ss:$0 sm:$0xff]  ;;  %s1605_s28 = smov 104   ;;  %s1606_s21 = smov 120  }
  0x2b   : > { %s521_s5 = scalar_select %p520_p13, %s1716_s17, 1  ;;  %592 = vmatpush.bf16.msra.mxu0 %v1273_v14  ;;  %v1377_v28 = vld [vmem:[%s1960_s2] ss:$0 sm:$0xff]  ;;  %vm605_vm5 = vcmask 64512   ;;  %v1219_v55 = vld [vmem:[%s1962_s4 + $0x8] sm:$0xff]  ;;  %v1223_v61 = vld [vmem:[%s1962_s4 + $0x10] sm:$0xff] }
  0x2c   : > { %s1607_s26 = smov 96   ;;  %s1608_s27 = smov 72   ;;  %v626_v49 = vld [vmem:[%s1962_s4] sm:$0xff]  ;;  %vm646_vm6 = vcmask 1043456   ;;  %vm730_vm7 = vcmask 130112   ;;  %vm798_vm8 = vcmask 195712  }
  0x2d   : > { %s1206_s3 = sshll.u32 %s521_s5, 3  ;;  %s1609_s18 = smov 88   ;;  %vm866_vm9 = vcmask 261312   ;;  %vm1014_vm13 = vcmask 523264  }
  0x2e   : > { %s1610_s20 = smov 112   ;;  %s1611_s5 = smov 80  }
  0x2f   : > { %s523_s16 = scalar_lea.vmem %s1995_s0, %s1206_s3  ;;  %593 = vmatpush.bf16.msra.mxu0 %v1272_v15  ;;  %s1979_s3 = smov 8  }
  0x30   : > { %v1786_v0 = vld [vmem:[%s523_s16] sm:$0xff]  ;;  %v1384_v3 = vpop.eup %1383  ;;  %s1617_s29 = smov 16   ;;  %s1618_s15 = smov 24  }
  0x31   : > { %v529_v1 = vsel %vm528_vm0, %v1786_v0, 0.0  ;;  %v533_v4 = vmul.f32 32.0, %v1384_v3  ;;  %vm537_vm1 = vweird.f32 %v1384_v3  ;;  %s1282_s25 = sshll.u32 %s1716_s17, 5  ;;  %s1515_s24 = scalar_lea.hbm %s1972_s14, 64 }
  0x32   : > { %530 = vadd.xlane.f32.xlu0 %v529_v1 }
  0x33   : > { %v534_v5 = vsub.f32 1.0, %v533_v4  ;;  %v1227_v4 = vld [vmem:[%s1962_s4 + $0x18] sm:$0xff] }
  0x35   : > { %v535_v6 = vmul.f32 %v1384_v3, %v534_v5 }
  0x37   : > { %v536_v7 = vadd.f32 %v1384_v3, %v535_v6 }
  0x39   : > { %v1790_v8 = vsel %vm537_vm1, %v1384_v3, %v536_v7 }
  0xa5   : > { %v531_v9 = vpop.xlane.xlu0 %530 }
  0xa6   : > { %v539_v10 = vmul.f32 %v1790_v8, %v531_v9 }
  0xa8   : > { %v540_v11 = vsub.f32 %v1786_v0, %v539_v10 }
  0xaa   : > { %v541_v12 = vmul.f32 %v540_v11, %v540_v11 }
  0xac   : > { %v542_v13 = vsel %vm528_vm0, %v541_v12, 0.0 }
  0xad   : > { %543 = vadd.xlane.f32.xlu0 %v542_v13 }
 0x120   : > { %v544_v16 = vpop.xlane.xlu0 %543 }
 0x121   : > { %v545_v17 = vmul.f32 %v544_v16, %v1790_v8 }
 0x123   : > { %v546_v18 = vadd.f32 1e-05, %v545_v17 }
 0x125   : > { %1385 = vrsqrt.f32 %v546_v18  ;;  %vm553_vm3 = vweird.f32 %v546_v18 }
 0x12b   : > { %v1386_v19 = vpop.eup %1385 }
 0x12c   : > { %v548_v20 = vmul.f32 %v1386_v19, %v546_v18  ;;  %vm554_vm2 = vweird.f32 %v1386_v19 }
 0x12d   : > { %vm555_vm4 = vmor %vm553_vm3, %vm554_vm2 }
 0x12e   : > { %v549_v21 = vmul.f32 %v1386_v19, %v548_v20 }
 0x130   : > { %v550_v22 = vmul.f32 0.5, %v549_v21 }
 0x132   : > { %v551_v23 = vsub.f32 1.5, %v550_v22 }
 0x134   : > { %v552_v24 = vmul.f32 %v1386_v19, %v551_v23 }
 0x136   : > { %v556_v26 = vsel %vm555_vm4, %v1386_v19, %v552_v24 }
 0x137   : > { %v557_v27 = vmul.f32 %v556_v26, %v540_v11 }
 0x139   : > { %v561_v29 = vmul.f32 %v1376_v25, %v557_v27 }
 0x13b   : > { %v565_v30 = vadd.f32 %v1377_v28, %v561_v29 }
 0x13d   : > { %v566_v31 = vpack.c.bf16 %v565_v30, %v565_v30 }
 0x13f   : > { %1215 = vmatmul.msk.bf16.vlgmr.msra.gmra.mxu0 %vm528_vm0, %v566_v31 }
 0x1bc   : > { %v595_v32 = vpop.f32.mrf.mxu0 }
 0x1bd   : > { %v599_v33 = vpack.c.bf16 %v595_v32, %v595_v32 }
 0x1bf   : > { %v601_v34 = vunpack.c.l.b16 %v599_v33 }
 0x1c1   : > { %v1803_v35 = vpack.c.b16 %v601_v34, %v601_v34 }
 0x1c3   : > { %800 = vrot.lane.b32.xlu0 %v1803_v35, %s1605_s28  ;;  %664 = vrot.lane.b32.xlu2 %v1803_v35, %s1606_s21  ;;  %s1612_s28 = smov 64   ;;  %s1613_s21 = smov 56  }
 0x1c4   : > { %603 = vrot.lane.b32.xlu1 %v1803_v35, %s1607_s26  ;;  %v597_v36 = vpop.f32.mrf.mxu0  ;;  %s1614_s26 = smov 40  }
 0x1cb   : > { %802 = vrot.lane.b32.xlu2 %v1803_v35, %s1608_s27  ;;  %s1615_s27 = smov 48  }
 0x1cc   : > { %666 = vrot.lane.b32.xlu1 %v1803_v35, %s1609_s18  ;;  %s1848_s18 = sand.u32 1, %s1589_s30  }
 0x1d3   : > { %732 = vrot.lane.b32.xlu2 %v1803_v35, %s1610_s20  ;;  %s1205_s20 = sshll.u32 %s1848_s18, 5 }
 0x1d4   : > { %734 = vrot.lane.b32.xlu1 %v1803_v35, %s1611_s5  ;;  %s1851_s5 = scalar_lea.vmem [#allocation10], %s1205_s20 }
 0x21d   : > { %v665_v37 = vpop.permute.xlu2 %664 }
 0x225   : > { %v803_v40 = vpop.permute.xlu2 %802 }
 0x226   : > { %v808_v43 = vsel %vm605_vm5, %v803_v40, 0 }
 0x22d   : > { %v733_v46 = vpop.permute.xlu2 %732 }
 0x235   : > { %v801_v47 = vpop.permute.xlu0 %800 }
 0x236   : > { %v604_v38 = vpop.permute.xlu1 %603 }
 0x237   : > { %v610_v39 = vsel %vm605_vm5, %v604_v38, 0 }
 0x238   : > { %619 = vmatpush.bf16.xpose.msra.mxu1 %v610_v39 }
 0x23e   : > { %v667_v41 = vpop.permute.xlu1 %666 }
 0x23f   : > { %1216 = vmatmul.msk.bf16.vlgmr.msra.gmra.mxu1 %vm605_vm5, %v599_v33  ;;  %v672_v42 = vsel %vm605_vm5, %v667_v41, 0 }
 0x240   : > { %681 = vmatpush.bf16.xpose.msra.mxu3 %v672_v42 }
 0x246   : > { %v735_v44 = vpop.permute.xlu1 %734 }
 0x247   : > { %1218 = vmatmul.msk.bf16.vlgmr.msra.gmra.mxu3 %vm605_vm5, %v665_v37  ;;  %v740_v45 = vsel %vm605_vm5, %v735_v44, 0 }
 0x248   : > { %817 = vmatpush.bf16.xpose.msrb.mxu3 %v808_v43  ;;  %749 = vmatpush.bf16.xpose.msrb.mxu0 %v740_v45 }
 0x24f   : > { %1222 = vmatmul.msk.bf16.vlgmr.msrb.gmra.mxu0 %vm605_vm5, %v733_v46 }
 0x257   : > { %1226 = vmatmul.msk.bf16.vlgmr.msrb.gmra.mxu3 %vm605_vm5, %v801_v47 }
 0x2bc   : > { %v621_v48 = vpop.f32.mrf.mxu1 }
 0x2bd   : > { %v625_v50 = vmul.f32 0.35355338, %v621_v48 }
 0x2bf   : > { %v627_v51 = vadd.f32 %v626_v49, %v625_v50 }
 0x2c1   : > { %v628_v52 = vsel %vm605_vm5, %v627_v51, -inf }
 0x2c2   : > { %629 = vmax.xlane.f32.xlu1 %v628_v52 }
 0x2c4   : > { %v623_v53 = vpop.f32.mrf.mxu1 }
 0x2ca   : > { %v683_v54 = vpop.f32.mrf.mxu3 }
 0x2cb   : > { %v687_v56 = vmul.f32 0.35355338, %v683_v54 }
 0x2cc   : > { %v751_v57 = vpop.f32.mrf.mxu0 }
 0x2cd   : > { %v690_v58 = vadd.f32 %v1219_v55, %v687_v56  ;;  %v755_v59 = vmul.f32 0.35355338, %v751_v57 }
 0x2cf   : > { %v691_v60 = vsel %vm605_vm5, %v690_v58, -inf  ;;  %v758_v63 = vadd.f32 %v1223_v61, %v755_v59 }
 0x2d0   : > { %692 = vmax.xlane.f32.xlu2 %v691_v60 }
 0x2d1   : > { %v759_v2 = vsel %vm605_vm5, %v758_v63, -inf }
 0x2d2   : > { %v685_v62 = vpop.f32.mrf.mxu3 }
 0x2d3   : > { %v1275_v62 = vld [vmem:[#allocation6 + $0x8] sm:$0xff] }
 0x2d4   : > { %v753_v1 = vpop.f32.mrf.mxu0  ;;  %899 = vmatpush.bf16.msra.mxu0 %v1275_v62 }
 0x2d8   : > { %760 = vmax.xlane.f32.xlu2 %v759_v2 }
 0x2da   : > { %v819_v3 = vpop.f32.mrf.mxu3 }
 0x2db   : > { %v823_v5 = vmul.f32 0.35355338, %v819_v3 }
 0x2dd   : > { %v826_v6 = vadd.f32 %v1227_v4, %v823_v5 }
 0x2df   : > { %v827_v7 = vsel %vm605_vm5, %v826_v6, -inf }
 0x2e0   : > { %828 = vmax.xlane.f32.xlu0 %v827_v7 }
 0x2e2   : > { %v821_v9 = vpop.f32.mrf.mxu3 }
 0x2f0   : > { %641 = vrot.lane.b32.xlu2 %v1803_v35, %s1612_s28  ;;  %s1065_s28 = sshll.u32 %s1851_s5, 4  ;;  %s1066_s28 = int_to_ptr.vmem [resolvable:$true] %s1065_s28 }
 0x2f4   : > { %705 = vrot.lane.b32.xlu0 %v1803_v35, %s1613_s21 }
 0x2f8   : > { %841 = vrot.lane.b32.xlu2 %v1803_v35, %s1614_s26 }
 0x2fc   : > { %773 = vrot.lane.b32.xlu0 %v1803_v35, %s1615_s27  ;;  %s1064_s27 = scalar_lea.hbm %s1972_s14, %s1282_s25 }
 0x2fd   : > { %s1067_s20 = sshll.u32 %s1064_s27, 4  ;;  %s1068_s20 = int_to_ptr.hbm [resolvable:$true] %s1067_s20 }
 0x335   : > { %v630_v10 = vpop.xlane.xlu1 %629 }
 0x336   : > { %v631_v11 = vsub.f32 %v627_v51, %v630_v10 }
 0x338   : > { %v632_v12 = vmul.f32 1.442695, %v631_v11 }
 0x33a   : > { %1387 = vpow2.f32 %v632_v12 }
 0x340   : > { %v1388_v13 = vpop.eup %1387 }
 0x341   : > { %v634_v14 = vsel %vm605_vm5, %v1388_v13, 0.0 }
 0x342   : > { %635 = vadd.xlane.f32.xlu1 %v634_v14 }
 0x343   : > { %v693_v15 = vpop.xlane.xlu2 %692 }
 0x344   : > { %v694_v16 = vsub.f32 %v690_v58, %v693_v15 }
 0x346   : > { %v695_v17 = vmul.f32 1.442695, %v694_v16 }
 0x348   : > { %1389 = vpow2.f32 %v695_v17 }
 0x34b   : > { %v761_v18 = vpop.xlane.xlu2 %760 }
 0x34c   : > { %v762_v25 = vsub.f32 %v758_v63, %v761_v18  ;;  %v1274_v63 = vld [vmem:[#allocation6] sm:$0xff]  ;;  %v1277_v18 = vld [vmem:[#allocation8 + $0x8] sm:$0xff] }
 0x34d   : > { %900 = vmatpush.bf16.msra.mxu0 %v1274_v63 }
 0x34e   : > { %v1390_v19 = vpop.eup %1389  ;;  %v763_v27 = vmul.f32 1.442695, %v762_v25 }
 0x34f   : > { %v697_v20 = vsel %vm605_vm5, %v1390_v19, 0.0 }
 0x350   : > { %698 = vadd.xlane.f32.xlu1 %v697_v20 }
 0x353   : > { %v829_v21 = vpop.xlane.xlu0 %828  ;;  %v642_v22 = vpop.permute.xlu2 %641 }
 0x354   : > { %v830_v23 = vsub.f32 %v826_v6, %v829_v21  ;;  %v648_v24 = vsel %vm646_vm6, %v642_v22, 0  ;;  %v1378_v6 = vld [vmem:[%s1964_s6] ss:$0 sm:$0xff]  ;;  %v1280_v22 = vld [vmem:[%s1969_s11 + $0x10] sm:$0xff] }
 0x355   : > { %657 = vmatpush.bf16.msra.mxu2 %v648_v24  ;;  %v1279_v24 = vld [vmem:[%s1969_s11 + $0x8] sm:$0xff] }
 0x356   : > { %v831_v26 = vmul.f32 1.442695, %v830_v23 }
 0x358   : > { %1391 = vpow2.f32 %v831_v26 }
 0x359   : > { %1393 = vpow2.f32 %v763_v27 }
 0x35b   : > { %v842_v39 = vpop.permute.xlu2 %841 }
 0x35c   : > { %v847_v41 = vsel %vm646_vm6, %v842_v39, 0 }
 0x35e   : > { %v1392_v28 = vpop.eup %1391 }
 0x35f   : > { %v833_v29 = vsel %vm605_vm5, %v1392_v28, 0.0  ;;  %v1394_v30 = vpop.eup %1393 }
 0x360   : > { %834 = vadd.xlane.f32.xlu1 %v833_v29  ;;  %v765_v32 = vsel %vm605_vm5, %v1394_v30, 0.0 }
 0x366   : > { %v706_v31 = vpop.permute.xlu0 %705 }
 0x367   : > { %v711_v33 = vsel %vm646_vm6, %v706_v31, 0 }
 0x368   : > { %766 = vadd.xlane.f32.xlu1 %v765_v32  ;;  %720 = vmatpush.bf16.msrb.mxu2 %v711_v33  ;;  %v1380_v33 = vld [vmem:[%s1966_s8] ss:$0 sm:$0xff] }
 0x36e   : > { %v774_v34 = vpop.permute.xlu0 %773 }
 0x36f   : > { %v779_v35 = vsel %vm646_vm6, %v774_v34, 0 }
 0x370   : > { %788 = vmatpush.bf16.msrb.mxu1 %v779_v35 }
 0x374   : > { %969 = vmatpush.bf16.msra.mxu1 %v1277_v18 }
 0x3b5   : > { %v636_v36 = vpop.xlane.xlu1 %635 }
 0x3b6   : > { %1395 = vrcp.f32 %v636_v36 }
 0x3bc   : > { %v1396_v37 = vpop.eup %1395 }
 0x3bd   : > { %v638_v38 = vmul.f32 %v1396_v37, %v1388_v13  ;;  %v1278_v37 = vld [vmem:[%s1969_s11] sm:$0xff] }
 0x3bf   : > { %v640_v40 = vpack.c.bf16 %v638_v38, %v638_v38  ;;  %639 = vst.msk [vmem:[%s1851_s5] sm:$0xff] %vm605_vm5, %v638_v38  ;;  %v1381_v38 = vld [vmem:[%s1968_s10] ss:$0 sm:$0xff] }
 0x3c1   : > { %1217 = vmatmul.msk.bf16.vlgmr.msra.gmra.mxu2 %vm605_vm5, %v640_v40 }
 0x3c2   : > { %856 = vmatpush.bf16.msra.mxu2 %v847_v41 }
 0x3c3   : > { %v699_v42 = vpop.xlane.xlu1 %698 }
 0x3c4   : > { %1397 = vrcp.f32 %v699_v42 }
 0x3ca   : > { %v1398_v43 = vpop.eup %1397 }
 0x3cb   : > { %v701_v44 = vmul.f32 %v1398_v43, %v1390_v19  ;;  %v1276_v19 = vld [vmem:[#allocation8] sm:$0xff] }
 0x3cc   : > { %970 = vmatpush.bf16.msra.mxu1 %v1276_v19 }
 0x3cd   : > { %1220 = vst.msk [vmem:[%s1851_s5 + $0x8] sm:$0xff] %vm605_vm5, %v701_v44  ;;  %v704_v45 = vpack.c.bf16 %v701_v44, %v701_v44 }
 0x3d1   : > { %1221 = vmatmul.msk.bf16.vlgmr.msrb.gmra.mxu2 %vm605_vm5, %v704_v45 }
 0x3d3   : > { %v835_v46 = vpop.xlane.xlu1 %834 }
 0x3d4   : > { %1399 = vrcp.f32 %v835_v46 }
 0x3da   : > { %v1400_v47 = vpop.eup %1399 }
 0x3db   : > { %v837_v48 = vmul.f32 %v1400_v47, %v1392_v28  ;;  %v767_v49 = vpop.xlane.xlu1 %766 }
 0x3dc   : > { %1401 = vrcp.f32 %v767_v49 }
 0x3dd   : > { %1228 = vst.msk [vmem:[%s1851_s5 + $0x18] sm:$0xff] %vm605_vm5, %v837_v48  ;;  %v840_v50 = vpack.c.bf16 %v837_v48, %v837_v48 }
 0x3e1   : > { %1229 = vmatmul.msk.bf16.vlgmr.msra.gmra.mxu2 %vm605_vm5, %v840_v50 }
 0x3e2   : > { %v1402_v51 = vpop.eup %1401 }
 0x3e3   : > { %v769_v52 = vmul.f32 %v1402_v51, %v1394_v30  ;;  %v1379_v30 = vld [vmem:[%s1965_s7] ss:$0 sm:$0xff] }
 0x3e5   : > { %v772_v53 = vpack.c.bf16 %v769_v52, %v769_v52  ;;  %1224 = vst.msk [vmem:[%s1851_s5 + $0x10] sm:$0xff] %vm605_vm5, %v769_v52 }
 0x3e7   : > { %1225 = vmatmul.msk.bf16.vlgmr.msrb.gmra.mxu1 %vm605_vm5, %v772_v53 }
 0x444   : > { %v659_v54 = vpop.f32.mrf.mxu2 }
 0x445   : > { %663 = vst.msk [vmem:[#allocation2] sm:$0xff] %vm605_vm5, %v659_v54 }
 0x44c   : > { %v661_v55 = vpop.f32.mrf.mxu2 }
 0x454   : > { %v722_v56 = vpop.f32.mrf.mxu2 }
 0x455   : > { %727 = vrot.lane.b32.xlu1 %v722_v56, %s1979_s3 }
 0x45c   : > { %v724_v57 = vpop.f32.mrf.mxu2 }
 0x464   : > { %v790_v58 = vpop.f32.mrf.mxu1  ;;  %v858_v59 = vpop.f32.mrf.mxu2 }
 0x465   : > { %795 = vrot.lane.b32.xlu2 %v790_v58, %s1617_s29  ;;  %863 = vrot.lane.b32.xlu0 %v858_v59, %s1618_s15  ;;  %s1039_s29 = scalar_lea.sflag [#allocation11], %s1848_s18  ;;  %s1509_s15 = sshra.s32 %s1068_s20, 4  ;;  %s1510_s15 = int_to_ptr.hbm [resolvable:$true] %s1509_s15 }
 0x466   : > { %s1511_s16 = scalar_lea.hbm %s1510_s15, 32  ;;  %p1516_p3 = scmp.lt.s32.totalorder %s1510_s15, %s1972_s14 }
 0x467   : > { %p1512_p0 = scmp.ne.s32.totalorder %s1510_s15, %s1511_s16  ;;  %p1517_p4 = scmp.lt.s32.totalorder %s1515_s24, %s1511_s16 }
 0x469   : > { %p1513_p1 = pnand %p1512_p0, %p1733_p5  ;;  %p1518_p7 = por %p1517_p4, %p1516_p3 }
 0x46b   : > { %p1514_p2 = pneg %p1513_p1 }
 0x46c   : > { %v792_v60 = vpop.f32.mrf.mxu1  ;;  %v860_v61 = vpop.f32.mrf.mxu2 }
 0x46d   : > { %p1519_p8 = pnand %p1518_p7, %p1514_p2 }
 0x4bf   : > { %v796_v2 = vpop.permute.xlu2 %795 }
 0x4c7   : > { %v728_v1 = vpop.permute.xlu1 %727 }
 0x4c8   : > { %731 = vst.msk [vmem:[#allocation2] sm:$0xff] %vm730_vm7, %v728_v1 }
 0x4c9   : > { %799 = vst.msk [vmem:[#allocation2] sm:$0xff] %vm798_vm8, %v796_v2 }
 0x4d7   : > { %v864_v3 = vpop.permute.xlu0 %863 }
 0x4d8   : > { %867 = vst.msk [vmem:[#allocation2] sm:$0xff] %vm866_vm9, %v864_v3 }
 0x4df   : > { %v868_v4 = vld [vmem:[#allocation2] sm:$0xff] }
 0x4e0   : > { %v869_v5 = vpack.c.bf16 %v868_v4, %v868_v4 }
 0x4e2   : > { %1238 = vmatmul.msk.bf16.vlgmr.msra.gmra.mxu0 %vm528_vm0, %v869_v5 }
 0x55f   : > { %v902_v7 = vpop.f32.mrf.mxu0 }
 0x560   : > { %v903_v9 = vadd.f32 %v1378_v6, %v902_v7 }
 0x562   : > { %v1873_v10 = vadd.f32 %v903_v9, %v1786_v0  ;;  %v1281_v0 = vld [vmem:[%s1969_s11 + $0x18] sm:$0xff] }
 0x563   : > { %1022 = vmatpush.bf16.msra.mxu3 %v1281_v0 }
 0x564   : > { %v909_v11 = vsel %vm528_vm0, %v1873_v10, 0.0 }
 0x565   : > { %910 = vadd.xlane.f32.xlu2 %v909_v11 }
 0x567   : > { %v904_v12 = vpop.f32.mrf.mxu0  ;;  %1023 = vmatpush.bf16.msra.mxu3 %v1280_v22 }
 0x56b   : > { %1024 = vmatpush.bf16.msra.mxu3 %v1279_v24 }
 0x56f   : > { %1025 = vmatpush.bf16.msra.mxu3 %v1278_v37 }
 0x5d8   : > { %v911_v13 = vpop.xlane.xlu2 %910 }
 0x5d9   : > { %v912_v14 = vmul.f32 %v911_v13, %v1790_v8 }
 0x5db   : > { %v913_v15 = vsub.f32 %v1873_v10, %v912_v14 }
 0x5dd   : > { %v914_v16 = vmul.f32 %v913_v15, %v913_v15 }
 0x5df   : > { %v915_v17 = vsel %vm528_vm0, %v914_v16, 0.0 }
 0x5e0   : > { %916 = vadd.xlane.f32.xlu0 %v915_v17 }
 0x653   : > { %v917_v20 = vpop.xlane.xlu0 %916 }
 0x654   : > { %v918_v21 = vmul.f32 %v917_v20, %v1790_v8 }
 0x656   : > { %v919_v23 = vadd.f32 1e-05, %v918_v21 }
 0x658   : > { %1403 = vrsqrt.f32 %v919_v23  ;;  %vm926_vm11 = vweird.f32 %v919_v23 }
 0x65e   : > { %v1404_v25 = vpop.eup %1403 }
 0x65f   : > { %v921_v26 = vmul.f32 %v1404_v25, %v919_v23  ;;  %vm927_vm10 = vweird.f32 %v1404_v25 }
 0x660   : > { %vm928_vm12 = vmor %vm926_vm11, %vm927_vm10 }
 0x661   : > { %v922_v27 = vmul.f32 %v1404_v25, %v921_v26 }
 0x663   : > { %v923_v28 = vmul.f32 0.5, %v922_v27 }
 0x665   : > { %v924_v29 = vsub.f32 1.5, %v923_v28 }
 0x667   : > { %v925_v8 = vmul.f32 %v1404_v25, %v924_v29 }
 0x669   : > { %v929_v31 = vsel %vm928_vm12, %v1404_v25, %v925_v8 }
 0x66a   : > { %v930_v32 = vmul.f32 %v929_v31, %v913_v15 }
 0x66c   : > { %v934_v34 = vmul.f32 %v1379_v30, %v930_v32 }
 0x66e   : > { %v938_v35 = vadd.f32 %v1380_v33, %v934_v34 }
 0x670   : > { %v939_v36 = vpack.c.bf16 %v938_v35, %v938_v35 }
 0x672   : > { %1247 = vmatmul.msk.bf16.vlgmr.msra.gmra.mxu1 %vm528_vm0, %v939_v36 }
 0x6ef   : > { %v972_v39 = vpop.f32.mrf.mxu1 }
 0x6f0   : > { %v973_v40 = vadd.f32 %v1381_v38, %v972_v39 }
 0x6f2   : > { %v976_v41 = vmax.f32 %v973_v40, 0.0 }
 0x6f4   : > { %v977_v42 = vpack.c.bf16 %v976_v41, %v976_v41 }
 0x6f6   : > { %1264 = vmatmul.msk.bf16.vlgmr.msra.gmra.mxu3 %vm1014_vm13, %v977_v42 }
 0x6f7   : > { %v974_v43 = vpop.f32.mrf.mxu1 }
 0x6f8   : > { %1522 = shalt.err (!%p1519_p8)
}
 0x6f9   : > { %s1619_s25 = smov 128   ;;  %s1996_s21 = smov 8   ;;  %v1382_v44 = vld [vmem:[%s1970_s12] ss:$0 sm:$0xff] }
 0x6fa   : > { %1296 = dma.vmem_to_hbm [thread:$0]  (%p1733_p5), %s1066_s28, 512, %s1068_s20, %s1039_s29, %s1619_s25, %s1619_s25, %s1996_s21  }
 0x6fb   : > { %s1204_s26 = sshll.u32 %s1848_s18, 3  ;;  %s1267_s27 = sshll.u32 %s1716_s17, 3 }
 0x6fc   : > { %s1049_s16 = scalar_lea.hbm %s1971_s13, %s1267_s27  ;;  %s512_s24 = scalar_lea.vmem [#allocation9], %s1204_s26 }
 0x6fd   : > { %s1051_s5 = sshll.u32 %s512_s24, 4  ;;  %s1053_s0 = sshll.u32 %s1049_s16, 4  ;;  %s1052_s5 = int_to_ptr.vmem [resolvable:$true] %s1051_s5  ;;  %s1054_s0 = int_to_ptr.hbm [resolvable:$true] %s1053_s0 }
 0x6fe   : > { %s1034_s17 = scalar_lea.sflag [#allocation5], %s1848_s18  ;;  %s1537_s28 = sshra.s32 %s1054_s0, 4  ;;  %s1538_s28 = int_to_ptr.hbm [resolvable:$true] %s1537_s28 }
 0x6ff   : > { %s1539_s20 = scalar_lea.hbm %s1538_s28, 8  ;;  %s1543_s21 = scalar_lea.hbm %s1971_s13, 16 }
 0x700   : > { %p1540_p9 = scmp.ne.s32.totalorder %s1538_s28, %s1539_s20  ;;  %p1544_p12 = scmp.lt.s32.totalorder %s1538_s28, %s1971_s13 }
 0x701   : > { %p1545_p13 = scmp.lt.s32.totalorder %s1543_s21, %s1539_s20 }
 0x702   : > { %p1541_p10 = pnand %p1540_p9, %p1733_p5 }
 0x703   : > { %p1546_p0 = por %p1545_p13, %p1544_p12 }
 0x704   : > { %p1542_p11 = pneg %p1541_p10 }
 0x706   : > { %p1547_p1 = pnand %p1546_p0, %p1542_p11 }
 0x779   : > { %v1027_v45 = vpop.f32.mrf.mxu3 }
 0x77a   : > { %v1028_v46 = vadd.f32 %v1382_v44, %v1027_v45 }
 0x77c   : > { %v1031_v47 = vadd.f32 %v1028_v46, %v1873_v10 }
 0x77e   : > { %1032 = vst.msk [vmem:[%s512_s24] sm:$0xff] %vm528_vm0, %v1031_v47 }
 0x77f   : > { %1550 = shalt.err (!%p1547_p1)
}
 0x780   : > { %1295 = dma.vmem_to_hbm [thread:$0]  (%p1733_p5), %s1052_s5, 128, %s1054_s0, %s1034_s17  }
 0x781   : > { %v1029_v48 = vpop.f32.mrf.mxu3 }
 0x782 PF: > { %s1997_s18 = sld [smem:[#allocation18_spill]] }
 0x783   : > { %s1998_s19 = sld [smem:[#allocation16_spill]] }
 0x788   : > { %p1322_p2 = scmp.ge.s32.totalorder %s1997_s18, 2 }
 0x789   : > { %s1082_s3 = sand.u32 1, %s1998_s19  }
 0x78a   : > { %p1310_p3 = pnand %p1322_p2, %p1737_p6  ;;  %s1083_s15 = scalar_lea.sflag [#allocation5], %s1082_s3 }
 0x78c   : > { %p1311_p4 = pneg %p1310_p3 }
 0x78e   : > { %1576 = dma.done.wait (%p1311_p4), %s1083_s15, 128  }
 0x78f   : > { %1578 = vsyncadd (%p1311_p4), %s1083_s15, 4294967168  ;;  %s1093_s16 = scalar_lea.sflag [#allocation11], %s1082_s3 }
 0x790   : > { %1580 = dma.done.wait (%p1311_p4), %s1093_s16, 512  }
 0x791   : > { %1582 = vsyncadd (%p1311_p4), %s1093_s16, 4294966784  ;;  %s2000_s16 = sld [smem:[#allocation19_spill]]  ;;  %s2003_s29 = smov %s1589_s30 }
 0x792   : > { %s2001_s23 = sld [smem:[#allocation17_spill]] }
 0x793   : > { %s2002_s15 = sld [smem:[#allocation20_spill]] }
 0x797   : > { %p30_p5 = scmp.ge.s32.totalorder %s2000_s16, 4  }
 0x798   : > { %s2004_s30 = smov %s2001_s23 }
 0x799   :  { %32 = sbr.rel (!%p30_p5) target bundleno = 11 (0xb), region = 143 }
 0x79e   :  { %1099 = vsyncpa [#allocation4], 1 }
 0x79f   :  { %1101 = vsyncpa [#allocation4 + $0x1], 1 }
 0x7a0   :  { %1102 = vsyncpa [#allocation7], 1 }
 0x7a1   :  { %1103 = vsyncpa [#allocation5], 1 }
 0x7a2   :  { %1105 = vsyncpa [#allocation5 + $0x1], 1 }
 0x7a3   :  { %1106 = vsyncpa [#allocation11], 1 }
 0x7a4   :  { %1108 = vsyncpa [#allocation11 + $0x1], 1 }

</bundles_post_ra>
